<compile_context>
chip_gen: v6e
topology: v6e:2x2x1
jax: 0.10.0
libtpu: 0.0.40
codegen_flags: <defaults>
</compile_context>

<pallas_src>
import math

import jax
import jax.numpy as jnp
import numpy as np
from jax.experimental import pallas as pl
from jax.experimental.pallas import tpu as pltpu


def _round_up(x: int, m: int) -> int:
    return ((x + m - 1) // m) * m


# -----------------------------------------------------------------------------
# Hyper-network (ParameterGenerator, dynamic=True) — plain JAX, run once per key.
# -----------------------------------------------------------------------------
def _mlp3(layers, x):
    (w1, b1), (w2, b2), (w3, b3) = layers
    h = jax.nn.relu(x @ w1 + b1)
    h = jax.nn.relu(h @ w2 + b2)
    return h @ w3 + b3


def _init_linear(key, fan_in, fan_out):
    kw, kb = jax.random.split(key)
    bound = 1.0 / math.sqrt(fan_in)
    w = jax.random.uniform(kw, (fan_in, fan_out), jnp.float32, -bound, bound)
    b = jax.random.uniform(kb, (fan_out,), jnp.float32, -bound, bound)
    return w, b


def init_meta_hetero_dict_linear(key, memory_size, in_channels, out_channels):
    hidden = memory_size // 2
    ks = jax.random.split(key, 6)
    return {
        "weight_generator": [
            _init_linear(ks[0], memory_size, hidden),
            _init_linear(ks[1], hidden, hidden),
            _init_linear(ks[2], hidden, in_channels * out_channels),
        ],
        "bias_generator": [
            _init_linear(ks[3], memory_size, hidden),
            _init_linear(ks[4], hidden, hidden),
            _init_linear(ks[5], hidden, out_channels),
        ],
    }


# -----------------------------------------------------------------------------
# Pallas kernel: one row tile of the grouped  x @ W + b
# -----------------------------------------------------------------------------
def _meta_linear_kernel(kid_ref, x_ref, w_ref, b_ref, o_ref):
    # kid_ref : SMEM (num_tiles,) int32 — consumed by the index_maps only.
    # x_ref   : VMEM (tn, Cin)      compute_dtype   row tile of concatenated x
    # w_ref   : VMEM (Cin, Cout_p)  compute_dtype   this tile's per-key weight slab
    # b_ref   : VMEM (1, Cout_p)    f32             this tile's per-key bias
    # o_ref   : VMEM (tn, Cout_p)   compute_dtype   lane-dense output tile
    acc = jnp.dot(x_ref[...], w_ref[...], preferred_element_type=jnp.float32)
    o_ref[...] = (acc + b_ref[...]).astype(o_ref.dtype)


# -----------------------------------------------------------------------------
# x staging (pre-stage once and reuse via `staged=` if the forward is called
# repeatedly with the same x_dict, e.g. across GNN layers).
# -----------------------------------------------------------------------------
def stage_x_dict(x_dict, keys, in_channels, compute_dtype=jnp.bfloat16,
                 tile_rows=None):
    n_rows = [int(x_dict[k].shape[0]) for k in keys]
    if tile_rows is None:
        tile_rows = int(np.median(n_rows)) if n_rows else 128
    # >=128 amortizes per-grid-step overhead, <=512 keeps VMEM modest,
    # multiple of 16 for bf16 sublane packing.
    tn = min(512, max(128, _round_up(max(tile_rows, 1), 16)))

    x_blocks, key_ids, row_starts = [], [], []
    cur = 0
    for j, k in enumerate(keys):
        n = n_rows[j]
        n_pad = _round_up(max(n, 1), tn)
        # Fused cast + row-pad (single pass); K dimension stays un-padded.
        xk = jnp.asarray(x_dict[k], jnp.float32).astype(compute_dtype)
        x_blocks.append(jnp.pad(xk, ((0, n_pad - n), (0, 0))))
        key_ids.extend([j] * (n_pad // tn))
        row_starts.append(cur)
        cur += n_pad
    x_cat = jnp.concatenate(x_blocks, axis=0) if len(x_blocks) > 1 else x_blocks[0]
    return {
        "x_cat": x_cat,                                   # (total_rows, Cin)
        "key_ids": jnp.asarray(key_ids, jnp.int32),       # (num_tiles,)
        "row_starts": row_starts,
        "n_rows": n_rows,
        "tn": tn,
        "total_rows": cur,
    }


# -----------------------------------------------------------------------------
# Forward pass wrapper
# -----------------------------------------------------------------------------
def meta_hetero_dict_linear_forward(params, x_dict, node_feas_dict,
                                    in_channels, out_channels,
                                    compute_dtype=jnp.bfloat16,
                                    tile_rows=None, staged=None):
    """Pallas TPU forward for MetaHeteroDictLinear(dynamic=True).

    compute_dtype: dtype of the x / W matmul operands and of the stored output
    (accumulation and bias add are always f32). Pass jnp.float32 if the
    application cannot tolerate bf16 rounding of the generated weights.
    """
    keys = [k for k in node_feas_dict if k in x_dict]
    if not keys:
        return {}
    num_keys = len(keys)

    # ---- 1. Hyper-network: generate (W, b) for all keys at once (plain JAX). ----
    mem = jnp.stack([jnp.asarray(node_feas_dict[k], jnp.float32).reshape(-1)
                     for k in keys])                                   # (K, M)
    w_all = _mlp3(params["weight_generator"], mem).reshape(
        num_keys, in_channels, out_channels)                           # (K, Cin, Cout)
    b_all = _mlp3(params["bias_generator"], mem)                       # (K, Cout)

    # ---- 2. W / b layout: K un-padded; Cout padded to 128 (lane-dense output). ----
    cout_p = _round_up(out_channels, 128)
    w_pad = jnp.pad(w_all.astype(compute_dtype),
                    ((0, 0), (0, 0), (0, cout_p - out_channels)))      # (K, Cin, Cout_p)
    b_pad = jnp.pad(b_all, ((0, 0), (0, cout_p - out_channels)))[:, None, :]  # (K,1,Cout_p) f32

    # ---- 3. Stage x (fused cast+pad; reusable across calls). ----
    if staged is None:
        staged = stage_x_dict(x_dict, keys, in_channels, compute_dtype, tile_rows)
    x_cat = staged["x_cat"]
    key_ids = staged["key_ids"]
    tn = staged["tn"]
    total_rows = staged["total_rows"]
    num_tiles = int(key_ids.shape[0])

    # ---- 4. Explicit VMEM budget (double-buffered footprint) + cost estimate. ----
    esize = jnp.dtype(compute_dtype).itemsize

    def _vmem_tile_bytes(r, c, nbytes):   # conservative: lane/sublane padded
        return _round_up(r, 16) * _round_up(c, 128) * nbytes

    per_buf = (_vmem_tile_bytes(tn, in_channels, esize)          # x tile
               + _vmem_tile_bytes(in_channels, cout_p, esize)    # W slab
               + _vmem_tile_bytes(1, cout_p, 4)                  # bias
               + _vmem_tile_bytes(tn, cout_p, esize))            # out tile
    # >= default scoped limit (32 MiB v6e/v7x), <= physical VMEM on v7x (64 MiB).
    vmem_limit = int(min(max(2 * per_buf + (8 << 20), 32 << 20), 64 << 20))

    cost = pl.CostEstimate(
        flops=2 * total_rows * in_channels * cout_p,
        transcendentals=0,
        bytes_accessed=(total_rows * in_channels * esize          # x in
                        + num_keys * in_channels * cout_p * esize  # W in
                        + num_keys * cout_p * 4                    # b in
                        + total_rows * cout_p * esize),            # out
    )

    # ---- 5. One grouped pallas_call over all keys (scalar-prefetch key ids). ----
    out_cat = pl.pallas_call(
        _meta_linear_kernel,
        out_shape=jax.ShapeDtypeStruct((total_rows, cout_p), compute_dtype),
        grid_spec=pltpu.PrefetchScalarGridSpec(
            num_scalar_prefetch=1,
            grid=(num_tiles,),
            in_specs=[
                # x: last block dim == full array dim (no 128 lane-padding of K).
                pl.BlockSpec((tn, in_channels), lambda i, kid: (i, 0)),
                # W: squeezed leading key axis -> kernel sees (Cin, Cout_p).
                pl.BlockSpec((pl.Squeezed(), in_channels, cout_p),
                             lambda i, kid: (kid[i], 0, 0)),
                # b: squeezed leading key axis -> kernel sees (1, Cout_p).
                pl.BlockSpec((pl.Squeezed(), 1, cout_p),
                             lambda i, kid: (kid[i], 0, 0)),
            ],
            out_specs=pl.BlockSpec((tn, cout_p), lambda i, kid: (i, 0)),
        ),
        compiler_params=pltpu.CompilerParams(
            dimension_semantics=("parallel",),
            vmem_limit_bytes=vmem_limit,
        ),
        cost_estimate=cost,
    )(key_ids, x_cat, w_pad, b_pad)

    # ---- 6. Compact per-key outputs: row slice + lane narrowing in ONE op each. ----
    out_dict = {}
    for j, k in enumerate(keys):
        r0 = staged["row_starts"][j]
        n = staged["n_rows"][j]
        out_dict[k] = out_cat[r0:r0 + n, :out_channels]
    return out_dict


# -----------------------------------------------------------------------------
# Pure-JAX references. compute_dtype=bf16 reproduces the kernel arithmetic
# (bf16 operands, f32 accumulation, bf16 store); None is the exact f32 module.
# -----------------------------------------------------------------------------
def reference_forward(params, x_dict, node_feas_dict, in_channels, out_channels,
                      compute_dtype=None):
    out = {}
    for k, feas in node_feas_dict.items():
        if k not in x_dict:
            continue
        m = jnp.asarray(feas, jnp.float32).reshape(1, -1)
        w = _mlp3(params["weight_generator"], m).reshape(in_channels, out_channels)
        b = _mlp3(params["bias_generator"], m).reshape(out_channels)
        x = jnp.asarray(x_dict[k], jnp.float32)
        if compute_dtype is not None:
            y = jnp.dot(x.astype(compute_dtype), w.astype(compute_dtype),
                        preferred_element_type=jnp.float32) + b
            out[k] = y.astype(compute_dtype)
        else:
            out[k] = x @ w + b
    return out


if __name__ == "__main__":
    memory_size = 32            # hidden_channels = memory_size // 2 = 16
    in_channels = 24
    out_channels = 40

    root = jax.random.PRNGKey(0)
    k_params, k_data = jax.random.split(root)
    params = init_meta_hetero_dict_linear(k_params, memory_size, in_channels, out_channels)

    # Heterogeneous node types; "inst" has no memory entry and "venue" has no
    # features, so both are skipped — same key intersection as the PyTorch code.
    kx = jax.random.split(k_data, 8)
    x_dict = {
        "paper":  jax.random.normal(kx[0], (40, in_channels), jnp.float32),
        "author": jax.random.normal(kx[1], (17, in_channels), jnp.float32),
        "field":  jax.random.normal(kx[2], (64, in_channels), jnp.float32),
        "inst":   jax.random.normal(kx[3], (8, in_channels), jnp.float32),
    }
    node_feas_dict = {
        "paper":  jax.random.normal(kx[4], (memory_size,), jnp.float32),
        "author": jax.random.normal(kx[5], (memory_size,), jnp.float32),
        "field":  jax.random.normal(kx[6], (memory_size,), jnp.float32),
        "venue":  jax.random.normal(kx[7], (memory_size,), jnp.float32),
    }

    out = meta_hetero_dict_linear_forward(
        params, x_dict, node_feas_dict, in_channels, out_channels)
    out = jax.block_until_ready(out)

    assert set(out.keys()) == {"paper", "author", "field"}
    for k in out:
        assert out[k].shape == (x_dict[k].shape[0], out_channels)

    ref_bf16 = jax.block_until_ready(
        reference_forward(params, x_dict, node_feas_dict, in_channels, out_channels,
                          compute_dtype=jnp.bfloat16))
    ref_f32 = jax.block_until_ready(
        reference_forward(params, x_dict, node_feas_dict, in_channels, out_channels,
                          compute_dtype=None))
    for k in out:
        got = np.asarray(out[k], dtype=np.float32)
        np.testing.assert_allclose(got, np.asarray(ref_bf16[k], dtype=np.float32),
                                   rtol=1e-2, atol=1e-2)
        np.testing.assert_allclose(got, np.asarray(ref_f32[k], dtype=np.float32),
                                   rtol=1e-1, atol=1e-1)

    print("KERNEL_OK")
</pallas_src>

<mosaic_0001>
module attributes {stable_mosaic.version = 11 : i64} {
  func.func @_meta_linear_kernel(%arg0: i32, %arg1: memref<3xi32, #tpu.memory_space<smem>>, %arg2: memref<128x24xbf16, #tpu.memory_space<vmem>>, %arg3: memref<1x24x128xbf16, #tpu.memory_space<vmem>>, %arg4: memref<1x1x128xf32, #tpu.memory_space<vmem>>, %arg5: memref<128x128xbf16, #tpu.memory_space<vmem>>) attributes {dimension_semantics = [#tpu.dimension_semantics<parallel>], iteration_bounds = array<i64: 3>, scalar_prefetch = 1 : i64, scratch_operands = 0 : i64, tpu.core_type = #tpu.core_type<tc>, window_params = [{transform_indices = @transform_0, window_bounds = array<i64: 128, 24>}, {transform_indices = @transform_1, window_bounds = array<i64: 1, 24, 128>}, {transform_indices = @transform_2, window_bounds = array<i64: 1, 1, 128>}, {transform_indices = @transform_3, window_bounds = array<i64: 128, 128>}]} {
    %c0 = arith.constant 0 : index
    %c0_0 = arith.constant 0 : index
    %0 = vector.load %arg2[%c0, %c0_0] : memref<128x24xbf16, #tpu.memory_space<vmem>>, vector<128x24xbf16>
    %c0_1 = arith.constant 0 : index
    %c0_2 = arith.constant 0 : index
    %c0_3 = arith.constant 0 : index
    %1 = vector.load %arg3[%c0_1, %c0_2, %c0_3] : memref<1x24x128xbf16, #tpu.memory_space<vmem>>, vector<1x24x128xbf16>
    %2 = vector.shape_cast %1 : vector<1x24x128xbf16> to vector<24x128xbf16>
    %cst = arith.constant dense<0.000000e+00> : vector<128x128xf32>
    %3 = tpu.matmul %0, %2, %cst {dimension_numbers = #tpu.dot_dimension_numbers<[1], [0], [0], [1], [0, 0, 1, 1], [], []>} : vector<128x24xbf16>, vector<24x128xbf16>, vector<128x128xf32> -> vector<128x128xf32>
    %c0_4 = arith.constant 0 : index
    %c0_5 = arith.constant 0 : index
    %c0_6 = arith.constant 0 : index
    %4 = vector.load %arg4[%c0_4, %c0_5, %c0_6] : memref<1x1x128xf32, #tpu.memory_space<vmem>>, vector<1x1x128xf32>
    %5 = vector.shape_cast %4 : vector<1x1x128xf32> to vector<1x128xf32>
    %6 = vector.broadcast %5 : vector<1x128xf32> to vector<128x128xf32>
    %7 = arith.addf %3, %6 : vector<128x128xf32>
    %8 = arith.truncf %7 : vector<128x128xf32> to vector<128x128xbf16>
    %c0_7 = arith.constant 0 : index
    %c0_8 = arith.constant 0 : index
    %9 = vector.load %arg5[%c0_7, %c0_8] : memref<128x128xbf16, #tpu.memory_space<vmem>>, vector<128x128xbf16>
    tpu.vector_store %arg5[%c0_7, %c0_8], %8 {strides = array<i32>} : memref<128x128xbf16, #tpu.memory_space<vmem>>, vector<128x128xbf16>,
    return
  }
  func.func @transform_0(%arg0: i32, %arg1: memref<3xi32, #tpu.memory_space<smem>>) -> (i32, i32) {
    %c0_i32 = arith.constant 0 : i32
    %c0_i32_0 = arith.constant 0 : i32
    return %arg0, %c0_i32 : i32, i32
  }
  func.func @transform_1(%arg0: i32, %arg1: memref<3xi32, #tpu.memory_space<smem>>) -> (i32, i32, i32) {
    %0 = arith.index_cast %arg0 : i32 to index
    %1 = memref.load %arg1[%0] : memref<3xi32, #tpu.memory_space<smem>>
    %c0_i32 = arith.constant 0 : i32
    %c0_i32_0 = arith.constant 0 : i32
    %c0_i32_1 = arith.constant 0 : i32
    return %1, %c0_i32, %c0_i32_0 : i32, i32, i32
  }
  func.func @transform_2(%arg0: i32, %arg1: memref<3xi32, #tpu.memory_space<smem>>) -> (i32, i32, i32) {
    %0 = arith.index_cast %arg0 : i32 to index
    %1 = memref.load %arg1[%0] : memref<3xi32, #tpu.memory_space<smem>>
    %c0_i32 = arith.constant 0 : i32
    %c0_i32_0 = arith.constant 0 : i32
    %c0_i32_1 = arith.constant 0 : i32
    return %1, %c0_i32, %c0_i32_0 : i32, i32, i32
  }
  func.func @transform_3(%arg0: i32, %arg1: memref<3xi32, #tpu.memory_space<smem>>) -> (i32, i32) {
    %c0_i32 = arith.constant 0 : i32
    %c0_i32_0 = arith.constant 0 : i32
    return %arg0, %c0_i32 : i32, i32
  }
}

</mosaic_0001>

<bundles_post_ra>
// kernel: tpu_custom_call.1
= control target key start
LH: loop header
LB: loop body
LE: loop exit
PB: predicated region body
PF: predicated region fallthrough
CT: control target
= control target key end

     0   :  { %s1047_s0 = inlined_call_operand.vmem [shape: s32[3], index: 0, kind: input, shape index: {}]   ;;  %s1048_s1 = inlined_call_operand.vmem [shape: bf16[384,24], index: 1, kind: input, shape index: {}]   ;;  %s1049_s2 = inlined_call_operand.vmem [shape: bf16[3,24,128], index: 2, kind: input, shape index: {}]   ;;  %s1050_s3 = inlined_call_operand.vmem [shape: f32[3,1,128], index: 3, kind: input, shape index: {}]   ;;  %s1051_s4 = inlined_call_operand.hbm [shape: bf16[384,128], index: 4, kind: output, shape index: {}]  }
   0x1   :  { %s9_s17 = sshll.u32 %s1047_s0, 4  ;;  %s10_s17 = int_to_ptr.vmem [resolvable:$true] %s9_s17 }
   0x2   :  { %s807_s18 = scalar_lea.vmem %s10_s17, 16  ;;  %p812_p1 = scmp.lt.s32.totalorder %s10_s17, %s10_s17 }
   0x3   :  { %p808_p0 = scmp.ne.s32.totalorder %s10_s17, %s807_s18  ;;  %p813_p2 = scmp.lt.s32.totalorder %s807_s18, %s807_s18 }
   0x5   :  { %p814_p3 = por %p813_p2, %p812_p1 }
   0x7   :  { %p815_p4 = pnand %p814_p3, %p808_p0 }
   0x9   :  { %818 = shalt.err (!%p815_p4)  }
   0xa   :  { %s883_s19 = smov [#allocation3]  }
   0xb   :  { %12 = dma.vmem_to_smem %s10_s17, 16, %s883_s19, [#allocation2] }
   0xc   :  { %861 = dma.done.wait [#allocation2], 16 }
   0xd   :  { %862 = vsyncadd [#allocation2], 4294967280 }
   0xe   :  { %14 = sfence }
   0xf   :  { %15 = vsyncpa [#allocation5], 0 }
  0x10   :  { %17 = vsyncpa [#allocation5 + $0x1], 0  ;;  %s915_s20 = smov 0   ;;  %s917_s21 = smov 0  }
  0x11   :  { %s919_s0 = smov 0   ;;  %s921_s22 = smov 0  }
  0x12 LB: > { %s936_s23 = sadd.s32 4294967295, %s881_s22   ;;  %s606_s24 = sadd.s32 4294967294, %s881_s22   ;;  %s881_s22 = sphi %s921_s22, %s1057_s22   ;;  %s877_s0 = sphi %s919_s0, %s1056_s0   ;;  %s873_s21 = sphi %s917_s21, %s1055_s21   ;;  %s869_s20 = sphi %s915_s20, %s1054_s20  }
  0x13   : > { %s940_s25 = sadd.s32 1, %s881_s22   ;;  %s112_s26 = sadd.s32 1, %s877_s0 }
  0x14   : > { %s109_s27 = ssub.s32 %s881_s22, %s940_s25  ;;  %p122_p5 = scmp.ne.s32.totalorder %s877_s0, %s873_s21 }
  0x15   : > { %p110_p6 = scmp.eq.s32.totalorder %s109_s27, 0  ;;  %p123_p7 = scmp.eq.s32.totalorder %s936_s23, 2 }
  0x16   : > { %p128_p8 = scmp.ne.s32.totalorder %s873_s21, %s869_s20  ;;  %p129_p9 = scmp.eq.s32.totalorder %s606_s24, 2 }
  0x17   : > { %s951_s28 = scalar_select %p110_p6, %s877_s0, %s112_s26  }
  0x18   : > { %p953_p10 = por %p123_p7, %p122_p5  ;;  %p957_p11 = por %p129_p9, %p128_p8 }
  0x19   : > { %p609_p12 = scmp.ge.s32.totalorder %s881_s22, 1  ;;  %p174_p13 = scmp.lt.s32.totalorder %s881_s22, 4 }
  0x1b   : > { %p175_p0 = pnand %p609_p12, %p174_p13 }
  0x1c   : > { %s214_s5 = sld [smem:[#allocation3 + %s936_s23]] (!%p175_p0)  ;;  %s611_s6 = sshll.u32 (!%p175_p0), %s936_s23, 4 }
  0x1d   : > { %178 = sbr.rel (%p175_p0) target bundleno = 274 (0x112), region = 32  ;;  %p209_p1 = scmp.lt.s32.totalorder (!%p175_p0), %s611_s6, 47 }
  0x1e   : > { %s221_s15 = sld [smem:[#allocation3 + %s936_s23]] (!%p175_p0)  ;;  %s205_s19 = sand.u32 (!%p175_p0), 1, %s873_s21  }
  0x1f   : > { %s610_s24 = sshll.u32 (!%p175_p0), %s205_s19, 6  ;;  %s670_s27 = sshll.u32 (!%p175_p0), %s936_s23, 10 }
  0x20   : > { %s986_s26 = scalar_lea.vmem (!%p175_p0), [#allocation4], %s610_s24  ;;  %s997_s8 = scalar_lea.hbm (!%p175_p0), %s1051_s4, %s670_s27 }
  0x21   : > { %s1007_s23 = scalar_lea.sflag (!%p175_p0), [#allocation5], %s205_s19 }
  0x22   : > { %s1059_s6 = smov (!%p209_p1, %s611_s6), 47  ;;  %p215_p2 = scmp.lt.s32.totalorder %s214_s5, 2  ;;  %vm303_vm0 = vcmask 195584   ;;  %vm328_vm1 = vcmask 1043456  }
  0x23   : > { %s612_s7 = sshll.u32 %s1059_s6, 2 }
  0x24   : > { %s212_s10 = scalar_lea.vmem %s1048_s1, %s612_s7  ;;  %s1061_s5 = smov (!%p215_p2, %s214_s5), 2 }
  0x25   : > { %v799_v0 = vld [vmem:[%s212_s10] sm:$0xff]   ;;  %s754_s11 = smul.u32 12, %s1061_s5  ;;  %v801_v5 = vld [vmem:[%s212_s10 + $0x8] sm:$0xff]   ;;  %v803_v7 = vld [vmem:[%s212_s10 + $0x10] sm:$0xff]   ;;  %p222_p3 = scmp.lt.s32.totalorder %s221_s15, 2 }
  0x26   : > { %v800_v1 = vld [vmem:[%s212_s10 + $0x20] sm:$0xff]   ;;  %732 = vmatprep.mubr.msk.bf16.mxu0 %vm303_vm0, %v799_v0  ;;  %v802_v6 = vld [vmem:[%s212_s10 + $0x28] sm:$0xff]   ;;  %v804_v8 = vld [vmem:[%s212_s10 + $0x30] sm:$0xff]   ;;  %s523_s5 = sshll.u32 %s986_s26, 4  ;;  %s999_s5 = int_to_ptr.vmem [resolvable:$true] %s523_s5 }
  0x27   : > { %740 = vmatprep.mubr.msk.bf16.mxu1 %vm303_vm0, %v800_v1  ;;  %s219_s14 = scalar_lea.vmem %s1049_s2, %s754_s11  ;;  %v805_v9 = vld [vmem:[%s212_s10 + $0x18] sm:$0xff]   ;;  %s1063_s15 = smov (!%p222_p3, %s221_s15), 2 }
  0x28   : > { %v797_v2 = vld [vmem:[%s219_s14 + $0x8] ss:$0 sps:$4 sm:$0xff]   ;;  %v798_v3 = vld [vmem:[%s219_s14] sm:$0xff]   ;;  %v806_v10 = vld [vmem:[%s212_s10 + $0x38] sm:$0xff]   ;;  %s224_s18 = scalar_lea.vmem %s1050_s3, %s1063_s15  ;;  %s819_s9 = scalar_lea.vmem %s999_s5, 1024 }
  0x29   : > { %752 = vmatprep.subr.msk.bf16.mxu0 %vm328_vm1, %v797_v2  ;;  %753 = vmatprep.subr.msk.bf16.mxu1 %vm328_vm1, %v797_v2  ;;  %v330_v4 = vsel %vm328_vm1, %v797_v2, 0  ;;  %v614_v13 = vld [vmem:[%s224_s18] ss:$0 sm:$0xff]  ;;  %p820_p4 = scmp.ne.s32.totalorder %s999_s5, %s819_s9  ;;  %s884_s10 = smov [#allocation4]  }
  0x2a   : > { %729 = vmatpush3.bf16.msra.mxu0 %v330_v4  ;;  %750 = vmatpush3.bf16.msra.mxu1 %v330_v4  ;;  %s823_s11 = sshll.u32 %s884_s10, 4  ;;  %s824_s11 = int_to_ptr.vmem [resolvable:$false] %s823_s11 }
  0x2b   : > { %730 = vmatprep.subr.bf16.mxu0 %v798_v3  ;;  %749 = vmatprep.subr.bf16.mxu1 %v798_v3  ;;  %p821_p5 = pnand %p820_p4, %p953_p10  ;;  %s825_s12 = scalar_lea.vmem %s824_s11, 2048 }
  0x2c   : > { %p826_p7 = scmp.lt.s32.totalorder %s999_s5, %s824_s11  ;;  %p827_p8 = scmp.lt.s32.totalorder %s825_s12, %s819_s9 }
  0x2d   : > { %p822_p6 = pneg %p821_p5 }
  0x2e   : > { %731 = vmatpush3.bf16.msra.mxu0 %v798_v3  ;;  %751 = vmatpush3.bf16.msra.mxu1 %v798_v3  ;;  %p828_p9 = por %p827_p8, %p826_p7 }
  0x30   : > { %p829_p12 = pnand %p828_p9, %p822_p6 }
  0x31   : > { %733 = vmatmul.mubr.msk.bf16.vlgmr.msra.gmra.mxu0 %vm303_vm0, %v801_v5  ;;  %741 = vmatmul.mubr.msk.bf16.vlgmr.msra.gmra.mxu1 %vm303_vm0, %v802_v6 }
  0x32   : > { %736 = vmatprep.mubr.msk.bf16.mxu0 %vm303_vm0, %v803_v7  ;;  %744 = vmatprep.mubr.msk.bf16.mxu1 %vm303_vm0, %v804_v8 }
  0x39   : > { %737 = vmatmul.mubr.msk.bf16.gmra.mxu0 %vm303_vm0, %v805_v9  ;;  %745 = vmatmul.mubr.msk.bf16.gmra.mxu1 %vm303_vm0, %v806_v10 }
  0xf1   : > { %v734_v11 = vpop.f32.mrf.mxu0  ;;  %v742_v12 = vpop.f32.mrf.mxu1 }
  0xf2   : > { %v375_v18 = vadd.f32 %v734_v11, %v614_v13  ;;  %v407_v19 = vadd.f32 %v742_v12, %v614_v13 }
  0xf3   : > { %v366_v14 = vpop.f32.mrf.mxu0  ;;  %v398_v15 = vpop.f32.mrf.mxu1 }
  0xf4   : > { %v367_v22 = vadd.f32 %v614_v13, %v366_v14  ;;  %v399_v23 = vadd.f32 %v614_v13, %v398_v15 }
  0xf5   : > { %v735_v16 = vpop.f32.mrf.mxu0  ;;  %v743_v17 = vpop.f32.mrf.mxu1 }
  0xf6   : > { %v378_v20 = vadd.f32 %v735_v16, %v614_v13  ;;  %v410_v21 = vadd.f32 %v743_v17, %v614_v13 }
  0xf7   : > { %v369_v24 = vpop.f32.mrf.mxu0  ;;  %v401_v25 = vpop.f32.mrf.mxu1 }
  0xf8   : > { %v679_v26 = vpack.c.bf16 %v378_v20, %v375_v18  ;;  %v699_v27 = vpack.c.bf16 %v410_v21, %v407_v19  ;;  %v370_v28 = vadd.f32 %v614_v13, %v369_v24  ;;  %v402_v29 = vadd.f32 %v614_v13, %v401_v25 }
  0xf9   : > { %v738_v30 = vpop.f32.mrf.mxu0  ;;  %v746_v31 = vpop.f32.mrf.mxu1 }
  0xfa   : > { %711 = vst [vmem:[%s986_s26 + $0x8] sm:$0xff] %v679_v26   ;;  %715 = vst [vmem:[%s986_s26 + $0x28] sm:$0xff] %v699_v27   ;;  %v674_v32 = vpack.c.bf16 %v370_v28, %v367_v22  ;;  %v694_v33 = vpack.c.bf16 %v402_v29, %v399_v23  ;;  %v391_v38 = vadd.f32 %v738_v30, %v614_v13 }
  0xfb   : > { %v382_v34 = vpop.f32.mrf.mxu0  ;;  %v414_v35 = vpop.f32.mrf.mxu1  ;;  %v423_v39 = vadd.f32 %v746_v31, %v614_v13 }
  0xfc   : > { %675 = vst [vmem:[%s986_s26] sm:$0xff] %v674_v32   ;;  %714 = vst [vmem:[%s986_s26 + $0x20] sm:$0xff] %v694_v33   ;;  %v383_v42 = vadd.f32 %v614_v13, %v382_v34  ;;  %v415_v43 = vadd.f32 %v614_v13, %v414_v35 }
  0xfd   : > { %v739_v36 = vpop.f32.mrf.mxu0  ;;  %v747_v37 = vpop.f32.mrf.mxu1 }
  0xfe   : > { %v394_v40 = vadd.f32 %v739_v36, %v614_v13  ;;  %v426_v41 = vadd.f32 %v747_v37, %v614_v13 }
  0xff   : > { %v385_v44 = vpop.f32.mrf.mxu0  ;;  %v417_v45 = vpop.f32.mrf.mxu1 }
 0x100   : > { %v689_v46 = vpack.c.bf16 %v394_v40, %v391_v38  ;;  %v709_v47 = vpack.c.bf16 %v426_v41, %v423_v39  ;;  %v386_v48 = vadd.f32 %v614_v13, %v385_v44  ;;  %v418_v49 = vadd.f32 %v614_v13, %v417_v45 }
 0x102   : > { %713 = vst [vmem:[%s986_s26 + $0x18] sm:$0xff] %v689_v46   ;;  %717 = vst [vmem:[%s986_s26 + $0x38] sm:$0xff] %v709_v47   ;;  %v684_v50 = vpack.c.bf16 %v386_v48, %v383_v42  ;;  %v704_v51 = vpack.c.bf16 %v418_v49, %v415_v43 }
 0x104   : > { %712 = vst [vmem:[%s986_s26 + $0x10] sm:$0xff] %v684_v50   ;;  %716 = vst [vmem:[%s986_s26 + $0x30] sm:$0xff] %v704_v51  }
 0x105   : > { %832 = shalt.err (!%p829_p12)
}
 0x106   : > { %s833_s13 = scalar_lea.hbm %s997_s8, 1024  ;;  %s837_s16 = scalar_lea.hbm %s1051_s4, 3072 }
 0x107   : > { %p834_p13 = scmp.ne.s32.totalorder %s997_s8, %s833_s13  ;;  %p838_p2 = scmp.lt.s32.totalorder %s997_s8, %s1051_s4 }
 0x108   : > { %p839_p3 = scmp.lt.s32.totalorder %s837_s16, %s833_s13 }
 0x109   : > { %p835_p0 = pnand %p834_p13, %p953_p10 }
 0x10a   : > { %p840_p4 = por %p839_p3, %p838_p2 }
 0x10b   : > { %p836_p1 = pneg %p835_p0 }
 0x10d   : > { %p841_p5 = pnand %p840_p4, %p836_p1 }
 0x10f   : > { %844 = shalt.err (!%p841_p5)
}
 0x110   : > { %s885_s19 = smov 64   ;;  %s886_s24 = smov 4  }
 0x111   : > { %755 = dma.vmem_to_hbm [thread:$0]  (%p953_p10), %s999_s5, 1024, %s997_s8, %s1007_s23, %s885_s19, %s885_s19, %s886_s24  }
 0x112 PF: > { %p761_p6 = scmp.ge.s32.totalorder %s881_s22, 2  ;;  %s538_s26 = sand.u32 1, %s869_s20  }
 0x113   : > { %s539_s27 = scalar_lea.sflag [#allocation5], %s538_s26 }
 0x114   : > { %p758_p7 = pnand %p761_p6, %p957_p11 }
 0x116   : > { %p759_p8 = pneg %p758_p7 }
 0x118   : > { %864 = dma.done.wait (%p759_p8), %s539_s27, 1024  }
 0x119   : > { %866 = vsyncadd (%p759_p8), %s539_s27, 4294966272  ;;  %p20_p9 = scmp.ge.s32.totalorder %s940_s25, 5   ;;  %s1054_s20 = smov %s873_s21 }
 0x11a   : > { %s1055_s21 = smov %s877_s0  ;;  %s1056_s0 = smov %s951_s28 }
 0x11b   : > { %s1057_s22 = smov %s940_s25  ;;  %22 = sbr.rel (!%p20_p9) target bundleno = 18 (0x12), region = 73 }
 0x120   :  { %544 = vsyncpa [#allocation5], 1 }
 0x121   :  { %546 = vsyncpa [#allocation5 + $0x1], 1 }

</bundles_post_ra>
